<compile_context>
chip_gen: v5e
topology: v5e:2x2
jax: 0.10.0
libtpu: 0.0.40
codegen_flags: <defaults>
</compile_context>

<pallas_src>
import functools

import jax
import jax.numpy as jnp
from jax.experimental import pallas as pl
from jax.experimental.pallas import tpu as pltpu


def _round_up(n, m):
    return ((n + m - 1) // m) * m


# ---------------------------------------------------------------------------
# Kernel
# ---------------------------------------------------------------------------
def autoencoder_kernel(x_ref, w1_ref, b1_ref, w2_ref, b2_ref, o_ref, *, approx_sigmoid):
    # Encoder: Linear + ReLU (f32 accumulate / epilogue).
    h = jnp.dot(x_ref[...], w1_ref[...], preferred_element_type=jnp.float32) + b1_ref[...]
    h = jnp.maximum(h, 0.0).astype(w2_ref.dtype)  # match the second MXU operand dtype

    # Decoder: Linear + Sigmoid.  sigmoid(y) = 1 / (1 + exp(-y)); exp (and, on the bf16
    # path, the approximate reciprocal) issue on the EUP slot — free relative to MXU/VALU.
    y = jnp.dot(h, w2_ref[...], preferred_element_type=jnp.float32) + b2_ref[...]
    out = pl.reciprocal(1.0 + jnp.exp(-y), approx=approx_sigmoid)
    o_ref[...] = out.astype(o_ref.dtype)


# ---------------------------------------------------------------------------
# One-time parameter preparation (hoisted out of the per-call path)
# ---------------------------------------------------------------------------
def prepare_params(w1, b1, w2, b2, *, mxu_dtype=None):
    """Pad weights/biases to lane-dense (multiple-of-128) shapes and cast weights once.

    w1: [D_in, D_enc], b1: [1, D_enc] (or [D_enc]), w2: [D_enc, D_in], b2: [1, D_in].
    mxu_dtype=None keeps f32 operands; jnp.bfloat16 streams bf16 weights/activations
    (f32 accumulate + f32 epilogue stay untouched).
    """
    D_in, D_enc = w1.shape
    d_in_p = _round_up(D_in, 128)
    d_enc_p = _round_up(D_enc, 128)
    op_dtype = jnp.dtype(mxu_dtype) if mxu_dtype is not None else jnp.dtype(w1.dtype)

    b1 = jnp.asarray(b1, jnp.float32).reshape(1, D_enc)
    b2 = jnp.asarray(b2, jnp.float32).reshape(1, D_in)

    if d_in_p == D_in and d_enc_p == D_enc:
        # No-pad fast path for the constants.
        w1p = w1.astype(op_dtype)
        w2p = w2.astype(op_dtype)
        b1p, b2p = b1, b2
    else:
        # Zero padding: padded x columns hit zero W1 rows -> contribute 0; padded h
        # features hit zero W2 rows -> contribute 0; padded output columns are sliced off.
        w1p = jnp.zeros((d_in_p, d_enc_p), op_dtype).at[:D_in, :D_enc].set(w1.astype(op_dtype))
        b1p = jnp.zeros((1, d_enc_p), jnp.float32).at[:, :D_enc].set(b1)
        w2p = jnp.zeros((d_enc_p, d_in_p), op_dtype).at[:D_enc, :D_in].set(w2.astype(op_dtype))
        b2p = jnp.zeros((1, d_in_p), jnp.float32).at[:, :D_in].set(b2)

    return {
        "w1p": w1p, "b1p": b1p, "w2p": w2p, "b2p": b2p,
        "d_in": D_in, "d_enc": D_enc, "d_in_p": d_in_p, "d_enc_p": d_enc_p,
        "op_dtype": op_dtype,
    }


def _pick_tile_b(batch, quantum):
    b_min = _round_up(max(batch, quantum), quantum)
    if b_min <= 256:
        # Toy/small batch: one grid step over the whole (padded) batch.
        return b_min
    if b_min <= 1024:
        # Mid-size batch: >= 2 grid steps so both v7x TensorCores get work through the
        # "parallel" batch axis; batch padding stays under one tile.
        return _round_up((b_min + 1) // 2, quantum)
    # Large batch: biggest tile <= 512 that keeps zero-row padding and per-step
    # overhead (~0.35us/step) small.
    best_t, best_cost = None, None
    for t in range(512, 127, -quantum):
        b_p = _round_up(batch, t)
        cost = (b_p - batch) + 32 * (b_p // t)  # wasted rows + per-step overhead (in "rows")
        if best_cost is None or cost < best_cost:
            best_t, best_cost = t, cost
    return best_t


# ---------------------------------------------------------------------------
# Forward wrapper
# ---------------------------------------------------------------------------
def autoencoder_forward(x, params, *, tile_b=None, out_dtype=None, weight_buffer_count=None):
    """x: [B, D_in]; params: output of prepare_params.

    out_dtype: output dtype (default: x.dtype).  Use jnp.bfloat16 to halve writeback bytes.
    weight_buffer_count: set to 1 on v7x with large D_in/D_enc to single-buffer the
      resident weights (pipeline_mode=pl.Buffered(1)); default None keeps Pallas defaults.
    """
    B, D_in = x.shape
    assert D_in == params["d_in"], "input feature dim mismatch with prepared params"
    d_in_p, d_enc_p = params["d_in_p"], params["d_enc_p"]
    op_dtype = params["op_dtype"]
    out_dtype = jnp.dtype(out_dtype) if out_dtype is not None else jnp.dtype(x.dtype)

    # Sublane quantum: bf16 packs (16,128) per vreg tile, f32 packs (8,128).
    quantum = 16 if (op_dtype == jnp.bfloat16 or out_dtype == jnp.bfloat16) else 8
    if tile_b is None:
        tile_b = _pick_tile_b(B, quantum)
    else:
        tile_b = _round_up(max(tile_b, quantum), quantum)
    b_p = _round_up(max(B, tile_b), tile_b)
    grid = (b_p // tile_b,)

    # Cast x to the streamed operand dtype in the wrapper (halves x DMA bytes for bf16),
    # and only materialize a padded copy when the shapes actually need it.
    x_in = x if jnp.dtype(x.dtype) == op_dtype else x.astype(op_dtype)
    needs_pad = (b_p != B) or (d_in_p != D_in)
    if needs_pad:
        xp = jnp.zeros((b_p, d_in_p), op_dtype).at[:B, :D_in].set(x_in)
    else:
        xp = x_in

    # VMEM budget: double-buffered streamed x/out tiles + resident weights + f32 temporaries.
    wbufs = 2 if weight_buffer_count is None else max(1, weight_buffer_count)
    vmem_need = (
        2 * tile_b * d_in_p * op_dtype.itemsize
        + 2 * tile_b * d_in_p * out_dtype.itemsize
        + wbufs * (2 * d_in_p * d_enc_p * op_dtype.itemsize + 4 * (d_in_p + d_enc_p))
        + 4 * tile_b * max(d_in_p, d_enc_p) * 4
    )
    vmem_limit = int(min(max(2 * vmem_need, 32 << 20), 112 << 20))

    def _weight_spec(shape):
        if weight_buffer_count is None:
            return pl.BlockSpec(shape, lambda i: (0, 0))
        return pl.BlockSpec(shape, lambda i: (0, 0),
                            pipeline_mode=pl.Buffered(weight_buffer_count))

    kernel = functools.partial(
        autoencoder_kernel, approx_sigmoid=(op_dtype == jnp.bfloat16))

    out_p = pl.pallas_call(
        kernel,
        out_shape=jax.ShapeDtypeStruct((b_p, d_in_p), out_dtype),
        grid_spec=pltpu.PrefetchScalarGridSpec(
            num_scalar_prefetch=0,
            grid=grid,
            in_specs=[
                pl.BlockSpec((tile_b, d_in_p), lambda i: (i, 0)),  # x tile (streamed)
                _weight_spec((d_in_p, d_enc_p)),                   # W1 (resident)
                _weight_spec((1, d_enc_p)),                        # b1
                _weight_spec((d_enc_p, d_in_p)),                   # W2 (resident)
                _weight_spec((1, d_in_p)),                         # b2
            ],
            out_specs=pl.BlockSpec((tile_b, d_in_p), lambda i: (i, 0)),
        ),
        compiler_params=pltpu.CompilerParams(
            dimension_semantics=("parallel",),
            vmem_limit_bytes=vmem_limit,
        ),
    )(xp, params["w1p"], params["b1p"], params["w2p"], params["b2p"])

    if needs_pad:
        out_p = out_p[:B, :D_in]
    return out_p


# ---------------------------------------------------------------------------
# Params init (PyTorch nn.Linear-style) and pure-JAX reference
# ---------------------------------------------------------------------------
def init_params(key, input_dim, encoding_dim, dtype=jnp.float32):
    """nn.Linear-style init (uniform +/- 1/sqrt(fan_in)); weights stored [in, out]."""
    k1, k2, k3, k4 = jax.random.split(key, 4)
    bound1 = 1.0 / (input_dim ** 0.5)
    bound2 = 1.0 / (encoding_dim ** 0.5)
    w1 = jax.random.uniform(k1, (input_dim, encoding_dim), dtype, -bound1, bound1)
    b1 = jax.random.uniform(k2, (1, encoding_dim), dtype, -bound1, bound1)
    w2 = jax.random.uniform(k3, (encoding_dim, input_dim), dtype, -bound2, bound2)
    b2 = jax.random.uniform(k4, (1, input_dim), dtype, -bound2, bound2)
    return w1, b1, w2, b2


def autoencoder_ref(x, w1, b1, w2, b2):
    h = jnp.maximum(x @ w1 + b1, 0.0)
    return jax.nn.sigmoid(h @ w2 + b2)


if __name__ == "__main__":
    key = jax.random.PRNGKey(0)
    kx, kp, kx2, kp2 = jax.random.split(key, 4)

    # --- Case 1: toy unaligned shapes (exercises the zero-padding path) ---------------
    batch, input_dim, encoding_dim = 16, 64, 32
    x = jax.random.normal(kx, (batch, input_dim), jnp.float32)
    w1, b1, w2, b2 = init_params(kp, input_dim, encoding_dim)
    ref = autoencoder_ref(x, w1, b1, w2, b2)

    # Strict f32 path (exact reciprocal in the sigmoid).
    params_f32 = prepare_params(w1, b1, w2, b2, mxu_dtype=None)
    out_f32 = jax.block_until_ready(autoencoder_forward(x, params_f32))
    assert out_f32.shape == (batch, input_dim)
    assert jnp.allclose(out_f32, ref, atol=2e-3, rtol=2e-3), "f32 path mismatch vs. reference"

    # bf16-streamed path (bf16 x/W DMA, f32 accumulate/epilogue, bf16 output writeback).
    params_bf16 = prepare_params(w1, b1, w2, b2, mxu_dtype=jnp.bfloat16)
    out_bf16 = jax.block_until_ready(
        autoencoder_forward(x, params_bf16, out_dtype=jnp.bfloat16))
    assert out_bf16.shape == (batch, input_dim)
    assert jnp.allclose(out_bf16.astype(jnp.float32), ref, atol=3e-2, rtol=3e-2), \
        "bf16 path mismatch vs. reference"

    # --- Case 2: lane-aligned shapes (exercises the no-pad fast path) -----------------
    batch2, input_dim2, encoding_dim2 = 32, 128, 128
    x2 = jax.random.normal(kx2, (batch2, input_dim2), jnp.float32)
    p2 = init_params(kp2, input_dim2, encoding_dim2)
    ref2 = autoencoder_ref(x2, *p2)
    params2 = prepare_params(*p2, mxu_dtype=jnp.bfloat16)
    out2 = jax.block_until_ready(autoencoder_forward(x2, params2))
    assert out2.shape == (batch2, input_dim2)
    assert jnp.allclose(out2, ref2, atol=3e-2, rtol=3e-2), "aligned bf16 path mismatch"

    print("KERNEL_OK")
</pallas_src>

<mosaic_0001>
module attributes {stable_mosaic.version = 11 : i64} {
  func.func @autoencoder_kernel(%arg0: i32, %arg1: memref<16x128xf32, #tpu.memory_space<vmem>>, %arg2: memref<128x128xf32, #tpu.memory_space<vmem>>, %arg3: memref<1x128xf32, #tpu.memory_space<vmem>>, %arg4: memref<128x128xf32, #tpu.memory_space<vmem>>, %arg5: memref<1x128xf32, #tpu.memory_space<vmem>>, %arg6: memref<16x128xf32, #tpu.memory_space<vmem>>) attributes {dimension_semantics = [#tpu.dimension_semantics<parallel>], iteration_bounds = array<i64: 1>, scalar_prefetch = 0 : i64, scratch_operands = 0 : i64, tpu.core_type = #tpu.core_type<tc>, window_params = [{transform_indices = @transform_0, window_bounds = array<i64: 16, 128>}, {pipeline_mode = #tpu.pipeline_mode<synchronous>, transform_indices = @transform_1, window_bounds = array<i64: 128, 128>}, {pipeline_mode = #tpu.pipeline_mode<synchronous>, transform_indices = @transform_2, window_bounds = array<i64: 1, 128>}, {pipeline_mode = #tpu.pipeline_mode<synchronous>, transform_indices = @transform_3, window_bounds = array<i64: 128, 128>}, {pipeline_mode = #tpu.pipeline_mode<synchronous>, transform_indices = @transform_4, window_bounds = array<i64: 1, 128>}, {transform_indices = @transform_5, window_bounds = array<i64: 16, 128>}]} {
    %c0 = arith.constant 0 : index
    %c0_0 = arith.constant 0 : index
    %0 = vector.load %arg1[%c0, %c0_0] : memref<16x128xf32, #tpu.memory_space<vmem>>, vector<16x128xf32>
    %c0_1 = arith.constant 0 : index
    %c0_2 = arith.constant 0 : index
    %1 = vector.load %arg2[%c0_1, %c0_2] : memref<128x128xf32, #tpu.memory_space<vmem>>, vector<128x128xf32>
    %cst = arith.constant dense<0.000000e+00> : vector<16x128xf32>
    %2 = tpu.matmul %0, %1, %cst {dimension_numbers = #tpu.dot_dimension_numbers<[1], [0], [0], [1], [0, 0, 1, 1], [], []>} : vector<16x128xf32>, vector<128x128xf32>, vector<16x128xf32> -> vector<16x128xf32>
    %c0_3 = arith.constant 0 : index
    %c0_4 = arith.constant 0 : index
    %3 = vector.load %arg3[%c0_3, %c0_4] : memref<1x128xf32, #tpu.memory_space<vmem>>, vector<1x128xf32>
    %4 = vector.broadcast %3 : vector<1x128xf32> to vector<16x128xf32>
    %5 = arith.addf %2, %4 : vector<16x128xf32>
    %cst_5 = arith.constant 0.000000e+00 : f32
    %6 = vector.broadcast %cst_5 : f32 to vector<16x128xf32>
    %7 = arith.maximumf %5, %6 : vector<16x128xf32>
    %c0_6 = arith.constant 0 : index
    %c0_7 = arith.constant 0 : index
    %8 = vector.load %arg4[%c0_6, %c0_7] : memref<128x128xf32, #tpu.memory_space<vmem>>, vector<128x128xf32>
    %cst_8 = arith.constant dense<0.000000e+00> : vector<16x128xf32>
    %9 = tpu.matmul %7, %8, %cst_8 {dimension_numbers = #tpu.dot_dimension_numbers<[1], [0], [0], [1], [0, 0, 1, 1], [], []>} : vector<16x128xf32>, vector<128x128xf32>, vector<16x128xf32> -> vector<16x128xf32>
    %c0_9 = arith.constant 0 : index
    %c0_10 = arith.constant 0 : index
    %10 = vector.load %arg5[%c0_9, %c0_10] : memref<1x128xf32, #tpu.memory_space<vmem>>, vector<1x128xf32>
    %11 = vector.broadcast %10 : vector<1x128xf32> to vector<16x128xf32>
    %12 = arith.addf %9, %11 : vector<16x128xf32>
    %cst_11 = arith.constant 0.000000e+00 : f32
    %13 = vector.broadcast %cst_11 : f32 to vector<16x128xf32>
    %14 = arith.subf %13, %12 : vector<16x128xf32>
    %15 = math.exp %14 : vector<16x128xf32>
    %cst_12 = arith.constant 1.000000e+00 : f32
    %16 = vector.broadcast %cst_12 : f32 to vector<16x128xf32>
    %17 = arith.addf %16, %15 : vector<16x128xf32>
    %18 = tpu.reciprocal %17 : vector<16x128xf32> -> vector<16x128xf32>
    %c0_13 = arith.constant 0 : index
    %c0_14 = arith.constant 0 : index
    %19 = vector.load %arg6[%c0_13, %c0_14] : memref<16x128xf32, #tpu.memory_space<vmem>>, vector<16x128xf32>
    tpu.vector_store %arg6[%c0_13, %c0_14], %18 {strides = array<i32>} : memref<16x128xf32, #tpu.memory_space<vmem>>, vector<16x128xf32>,
    return
  }
  func.func @transform_0(%arg0: i32) -> (i32, i32) {
    %c0_i32 = arith.constant 0 : i32
    %c0_i32_0 = arith.constant 0 : i32
    return %arg0, %c0_i32 : i32, i32
  }
  func.func @transform_1(%arg0: i32) -> (i32, i32) {
    %c0_i32 = arith.constant 0 : i32
    %c0_i32_0 = arith.constant 0 : i32
    %c0_i32_1 = arith.constant 0 : i32
    return %c0_i32, %c0_i32_0 : i32, i32
  }
  func.func @transform_2(%arg0: i32) -> (i32, i32) {
    %c0_i32 = arith.constant 0 : i32
    %c0_i32_0 = arith.constant 0 : i32
    %c0_i32_1 = arith.constant 0 : i32
    return %c0_i32, %c0_i32_0 : i32, i32
  }
  func.func @transform_3(%arg0: i32) -> (i32, i32) {
    %c0_i32 = arith.constant 0 : i32
    %c0_i32_0 = arith.constant 0 : i32
    %c0_i32_1 = arith.constant 0 : i32
    return %c0_i32, %c0_i32_0 : i32, i32
  }
  func.func @transform_4(%arg0: i32) -> (i32, i32) {
    %c0_i32 = arith.constant 0 : i32
    %c0_i32_0 = arith.constant 0 : i32
    %c0_i32_1 = arith.constant 0 : i32
    return %c0_i32, %c0_i32_0 : i32, i32
  }
  func.func @transform_5(%arg0: i32) -> (i32, i32) {
    %c0_i32 = arith.constant 0 : i32
    %c0_i32_0 = arith.constant 0 : i32
    return %arg0, %c0_i32 : i32, i32
  }
}

</mosaic_0001>

<bundles_post_ra>
// kernel: tpu_custom_call.1
= control target key start
LH: loop header
LB: loop body
LE: loop exit
PB: predicated region body
PF: predicated region fallthrough
CT: control target
= control target key end

     0   :  { %10 = vsyncpa [#allocation3], 0  ;;  %s432_s0 = inlined_call_operand.hbm [shape: f32[16,128], index: 0, kind: input, shape index: {}]   ;;  %s433_s1 = inlined_call_operand.hbm [shape: f32[128,128], index: 1, kind: input, shape index: {}]   ;;  %s434_s2 = inlined_call_operand.vmem [shape: f32[1,128], index: 2, kind: input, shape index: {}]   ;;  %s435_s3 = inlined_call_operand.hbm [shape: f32[128,128], index: 3, kind: input, shape index: {}]   ;;  %s436_s4 = inlined_call_operand.vmem [shape: f32[1,128], index: 4, kind: input, shape index: {}]   ;;  %s437_s5 = inlined_call_operand.hbm [shape: f32[16,128], index: 5, kind: output, shape index: {}]  }
   0x1   :  { %11 = vsyncpa [#allocation6], 0 }
   0x2   :  { %12 = vsyncpa [#allocation4], 0  ;;  %s30_s20 = sshll.u32 %s433_s1, 4  ;;  %s366_s21 = smov [#allocation5]   ;;  %s31_s20 = int_to_ptr.hbm [resolvable:$true] %s30_s20 }
   0x3   :  { %s32_s22 = sshll.u32 %s366_s21, 4  ;;  %s17_s25 = sshll.u32 %s432_s0, 4  ;;  %s33_s22 = int_to_ptr.vmem [resolvable:$true] %s32_s22  ;;  %s18_s25 = int_to_ptr.hbm [resolvable:$true] %s17_s25 }
   0x4   :  { %s367_s26 = smov 128   ;;  %s368_s27 = smov 8  }
   0x5   :  { %38 = dma.hbm_to_vmem [thread:$0]  %s31_s20, 2048, %s33_s22, [#allocation6], %s367_s26, %s367_s26, %s368_s27  }
   0x6   :  { %s369_s28 = smov [#allocation2]   ;;  %s45_s1 = sshll.u32 %s435_s3, 4  ;;  %s46_s1 = int_to_ptr.hbm [resolvable:$true] %s45_s1 }
   0x7   :  { %s19_s29 = sshll.u32 %s369_s28, 4  ;;  %s370_s0 = smov [#allocation7]   ;;  %s20_s29 = int_to_ptr.vmem [resolvable:$true] %s19_s29 }
   0x8   :  { %25 = dma.hbm_to_vmem [thread:$0]  %s18_s25, 256, %s20_s29, [#allocation3], %s367_s26, %s367_s26, %s368_s27  }
   0x9   :  { %s47_s7 = sshll.u32 %s370_s0, 4  ;;  %s48_s7 = int_to_ptr.vmem [resolvable:$true] %s47_s7 }
   0xa   :  { %53 = dma.hbm_to_vmem [thread:$0]  %s46_s1, 2048, %s48_s7, [#allocation6], %s367_s26, %s367_s26, %s368_s27  }
   0xb   :  { %360 = dma.done.wait [#allocation3], 256  }
   0xc   :  { %361 = vsyncadd [#allocation3], 4294967040 }
   0xd   :  { %362 = dma.done.wait [#allocation6], 4096  }
   0xe   :  { %363 = vsyncadd [#allocation6], 4294963200  ;;  %v85_v0 = vld [vmem:[#allocation5 + $0x78] sm:$0xff]  ;;  %v84_v1 = vld [vmem:[#allocation5 + $0x70] sm:$0xff]  ;;  %s202_s13 = sshll.u32 %s437_s5, 4  ;;  %s203_s13 = int_to_ptr.hbm [resolvable:$true] %s202_s13 }
   0xf   :  { %90 = vmatpush.msra.mxu0 %v85_v0  ;;  %216 = vmatpush.msra.mxu2 %v85_v0  ;;  %v83_v2 = vld [vmem:[#allocation5 + $0x68] sm:$0xff]  ;;  %v82_v3 = vld [vmem:[#allocation5 + $0x60] sm:$0xff]  ;;  %v81_v4 = vld [vmem:[#allocation5 + $0x58] sm:$0xff] }
  0x10   :  { %v130_v5 = vld [vmem:[#allocation7 + $0x78] sm:$0xff]  ;;  %v129_v6 = vld [vmem:[#allocation7 + $0x70] sm:$0xff]  ;;  %v128_v8 = vld [vmem:[#allocation7 + $0x68] sm:$0xff] }
  0x11   :  { %91 = vmatpush.msra.mxu0 %v84_v1  ;;  %217 = vmatpush.msra.mxu2 %v84_v1  ;;  %v80_v7 = vld [vmem:[#allocation5 + $0x50] sm:$0xff]  ;;  %v79_v9 = vld [vmem:[#allocation5 + $0x48] sm:$0xff]  ;;  %v127_v10 = vld [vmem:[#allocation7 + $0x60] sm:$0xff] }
  0x12   :  { %135 = vmatpush.msra.mxu1 %v130_v5  ;;  %232 = vmatpush.msra.mxu3 %v130_v5  ;;  %v78_v11 = vld [vmem:[#allocation5 + $0x40] sm:$0xff]  ;;  %v126_v12 = vld [vmem:[#allocation7 + $0x58] sm:$0xff]  ;;  %v125_v14 = vld [vmem:[#allocation7 + $0x50] sm:$0xff] }
  0x13   :  { %92 = vmatpush.msra.mxu0 %v83_v2  ;;  %218 = vmatpush.msra.mxu2 %v83_v2  ;;  %v77_v13 = vld [vmem:[#allocation5 + $0x38] sm:$0xff]  ;;  %v76_v15 = vld [vmem:[#allocation5 + $0x30] sm:$0xff]  ;;  %v124_v16 = vld [vmem:[#allocation7 + $0x48] sm:$0xff] }
  0x14   :  { %136 = vmatpush.msra.mxu1 %v129_v6  ;;  %233 = vmatpush.msra.mxu3 %v129_v6  ;;  %v75_v17 = vld [vmem:[#allocation5 + $0x28] sm:$0xff]  ;;  %v123_v18 = vld [vmem:[#allocation7 + $0x40] sm:$0xff]  ;;  %v122_v20 = vld [vmem:[#allocation7 + $0x38] sm:$0xff] }
  0x15   :  { %93 = vmatpush.msra.mxu0 %v82_v3  ;;  %219 = vmatpush.msra.mxu2 %v82_v3  ;;  %v74_v19 = vld [vmem:[#allocation5 + $0x20] sm:$0xff]  ;;  %v73_v21 = vld [vmem:[#allocation5 + $0x18] sm:$0xff]  ;;  %v121_v22 = vld [vmem:[#allocation7 + $0x30] sm:$0xff] }
  0x16   :  { %137 = vmatpush.msra.mxu1 %v128_v8  ;;  %234 = vmatpush.msra.mxu3 %v128_v8  ;;  %v72_v23 = vld [vmem:[#allocation5 + $0x10] sm:$0xff]  ;;  %v120_v24 = vld [vmem:[#allocation7 + $0x28] sm:$0xff]  ;;  %v119_v26 = vld [vmem:[#allocation7 + $0x20] sm:$0xff] }
  0x17   :  { %94 = vmatpush.msra.mxu0 %v81_v4  ;;  %220 = vmatpush.msra.mxu2 %v81_v4  ;;  %v71_v25 = vld [vmem:[#allocation5 + $0x8] sm:$0xff]  ;;  %v70_v27 = vld [vmem:[#allocation5] sm:$0xff]  ;;  %v68_v28 = vld [vmem:[#allocation2] sm:$0xff] }
  0x18   :  { %138 = vmatpush.msra.mxu1 %v127_v10  ;;  %235 = vmatpush.msra.mxu3 %v127_v10  ;;  %v69_v29 = vld [vmem:[#allocation2 + $0x8] sm:$0xff]  ;;  %v117_v31 = vld [vmem:[#allocation7 + $0x10] sm:$0xff]  ;;  %v116_v32 = vld [vmem:[#allocation7 + $0x8] sm:$0xff] }
  0x19   :  { %95 = vmatpush.msra.mxu0 %v80_v7  ;;  %221 = vmatpush.msra.mxu2 %v80_v7  ;;  %v118_v30 = vld [vmem:[#allocation7 + $0x18] sm:$0xff]  ;;  %v115_v33 = vld [vmem:[#allocation7] sm:$0xff]  ;;  %v254_v34 = vld [vmem:[%s434_s2] ss:$0 sm:$0xff]  ;;  %s371_s2 = smov [#allocation8]  }
  0x1a   :  { %139 = vmatpush.msra.mxu1 %v126_v12  ;;  %236 = vmatpush.msra.mxu3 %v126_v12  ;;  %v255_v41 = vld [vmem:[%s436_s4] ss:$0 sm:$0xff]  ;;  %s200_s4 = sshll.u32 %s371_s2, 4  ;;  %s201_s4 = int_to_ptr.vmem [resolvable:$true] %s200_s4 }
  0x1b   :  { %96 = vmatpush.msra.mxu0 %v79_v9  ;;  %222 = vmatpush.msra.mxu2 %v79_v9 }
  0x1c   :  { %140 = vmatpush.msra.mxu1 %v125_v14  ;;  %237 = vmatpush.msra.mxu3 %v125_v14 }
  0x1d   :  { %97 = vmatpush.msra.mxu0 %v78_v11  ;;  %223 = vmatpush.msra.mxu2 %v78_v11 }
  0x1e   :  { %141 = vmatpush.msra.mxu1 %v124_v16  ;;  %238 = vmatpush.msra.mxu3 %v124_v16 }
  0x1f   :  { %98 = vmatpush.msra.mxu0 %v77_v13  ;;  %224 = vmatpush.msra.mxu2 %v77_v13 }
  0x20   :  { %142 = vmatpush.msra.mxu1 %v123_v18  ;;  %239 = vmatpush.msra.mxu3 %v123_v18 }
  0x21   :  { %99 = vmatpush.msra.mxu0 %v76_v15  ;;  %225 = vmatpush.msra.mxu2 %v76_v15 }
  0x22   :  { %143 = vmatpush.msra.mxu1 %v122_v20  ;;  %240 = vmatpush.msra.mxu3 %v122_v20 }
  0x23   :  { %100 = vmatpush.msra.mxu0 %v75_v17  ;;  %226 = vmatpush.msra.mxu2 %v75_v17 }
  0x24   :  { %144 = vmatpush.msra.mxu1 %v121_v22  ;;  %241 = vmatpush.msra.mxu3 %v121_v22 }
  0x25   :  { %101 = vmatpush.msra.mxu0 %v74_v19  ;;  %227 = vmatpush.msra.mxu2 %v74_v19 }
  0x26   :  { %145 = vmatpush.msra.mxu1 %v120_v24  ;;  %242 = vmatpush.msra.mxu3 %v120_v24 }
  0x27   :  { %102 = vmatpush.msra.mxu0 %v73_v21  ;;  %228 = vmatpush.msra.mxu2 %v73_v21 }
  0x28   :  { %146 = vmatpush.msra.mxu1 %v119_v26  ;;  %243 = vmatpush.msra.mxu3 %v119_v26 }
  0x29   :  { %103 = vmatpush.msra.mxu0 %v72_v23  ;;  %229 = vmatpush.msra.mxu2 %v72_v23 }
  0x2a   :  { %147 = vmatpush.msra.mxu1 %v118_v30  ;;  %244 = vmatpush.msra.mxu3 %v118_v30 }
  0x2b   :  { %104 = vmatpush.msra.mxu0 %v71_v25  ;;  %230 = vmatpush.msra.mxu2 %v71_v25 }
  0x2c   :  { %148 = vmatpush.msra.mxu1 %v117_v31  ;;  %245 = vmatpush.msra.mxu3 %v117_v31 }
  0x2d   :  { %105 = vmatpush.msra.mxu0 %v70_v27  ;;  %231 = vmatpush.msra.mxu2 %v70_v27 }
  0x2e   :  { %106 = vmatmul.f32.vlgmr.msra.gmra.mxu0 %v68_v28  ;;  %109 = vmatmul.f32.vlgmr.msra.gmra.mxu2 %v69_v29 }
  0x2f   :  { %149 = vmatpush.msra.mxu1 %v116_v32  ;;  %246 = vmatpush.msra.mxu3 %v116_v32 }
  0x31   :  { %150 = vmatpush.msra.mxu1 %v115_v33  ;;  %247 = vmatpush.msra.mxu3 %v115_v33 }
  0xab   :  { %v107_v35 = vpop.f32.mrf.mxu0 }
  0xac   :  { %v108_v36 = vadd.f32 %v254_v34, %v107_v35 }
  0xae   :  { %v113_v37 = vmax.f32 %v108_v36, 0.0 }
  0xb0   :  { %151 = vmatmul.f32.vlgmr.msra.gmra.mxu1 %v113_v37 }
  0xb1   :  { %v110_v38 = vpop.f32.mrf.mxu2 }
  0xb2   :  { %v111_v39 = vadd.f32 %v254_v34, %v110_v38 }
  0xb4   :  { %v114_v40 = vmax.f32 %v111_v39, 0.0 }
  0xb6   :  { %154 = vmatmul.f32.vlgmr.msra.gmra.mxu3 %v114_v40 }
 0x12d   :  { %v152_v42 = vpop.f32.mrf.mxu1 }
 0x12e   :  { %v153_v43 = vadd.f32 %v255_v41, %v152_v42 }
 0x130   :  { %v158_v44 = vsub.f32 0.0, %v153_v43 }
 0x132   :  { %v160_v45 = vmul.f32 1.442695, %v158_v44 }
 0x134   :  { %256 = vpow2.f32 %v160_v45 }
 0x139   :  { %v155_v46 = vpop.f32.mrf.mxu3 }
 0x13a   :  { %v257_v47 = vpop.eup %256  ;;  %v156_v48 = vadd.f32 %v255_v41, %v155_v46 }
 0x13b   :  { %v164_v49 = vadd.f32 1.0, %v257_v47 }
 0x13c   :  { %v159_v50 = vsub.f32 0.0, %v156_v48 }
 0x13d   :  { %258 = vrcp.f32 %v164_v49  ;;  %v177_v54 = vand.u32 2147483648, %v164_v49  ;;  %vm171_vm0 = vweird.f32 %v164_v49  ;;  %v175_v57 = vand.u32 2147483647, %v164_v49 }
 0x13e   :  { %v162_v51 = vmul.f32 1.442695, %v159_v50 }
 0x13f   :  { %v178_v60 = vor.u32 1.1754944e-38, %v177_v54  ;;  %vm176_vm3 = vcmp.eq.f32.partialorder %v175_v57, 8.507059e+37 }
 0x140   :  { %260 = vpow2.f32 %v162_v51 }
 0x143   :  { %v259_v52 = vpop.eup %258 }
 0x144   :  { %v167_v53 = vmul.f32 %v259_v52, %v164_v49  ;;  %vm172_vm1 = vweird.f32 %v259_v52 }
 0x145   :  { %vm173_vm2 = vmor %vm171_vm0, %vm172_vm1 }
 0x146   :  { %v261_v55 = vpop.eup %260  ;;  %v168_v56 = vsub.f32 1.0, %v167_v53 }
 0x147   :  { %v165_v58 = vadd.f32 1.0, %v261_v55 }
 0x148   :  { %v169_v59 = vmul.f32 %v259_v52, %v168_v56 }
 0x149   :  { %262 = vrcp.f32 %v165_v58  ;;  %v191_v3 = vand.u32 2147483648, %v165_v58  ;;  %v189_v5 = vand.u32 2147483647, %v165_v58  ;;  %vm185_vm5 = vweird.f32 %v165_v58 }
 0x14a   :  { %v170_v61 = vadd.f32 %v259_v52, %v169_v59 }
 0x14b   :  { %v192_v7 = vor.u32 1.1754944e-38, %v191_v3  ;;  %vm190_vm7 = vcmp.eq.f32.partialorder %v189_v5, 8.507059e+37 }
 0x14c   :  { %v174_v62 = vsel %vm173_vm2, %v259_v52, %v170_v61 }
 0x14d   :  { %v179_v63 = vsel %vm176_vm3, %v178_v60, %v174_v62 }
 0x14e   :  { %194 = vst [vmem:[#allocation8] sm:$0xff] %v179_v63 }
 0x14f   :  { %v263_v0 = vpop.eup %262 }
 0x150   :  { %v181_v1 = vmul.f32 %v263_v0, %v165_v58  ;;  %vm186_vm4 = vweird.f32 %v263_v0 }
 0x151   :  { %vm187_vm6 = vmor %vm185_vm5, %vm186_vm4 }
 0x152   :  { %v182_v2 = vsub.f32 1.0, %v181_v1 }
 0x154   :  { %v183_v4 = vmul.f32 %v263_v0, %v182_v2 }
 0x156   :  { %v184_v6 = vadd.f32 %v263_v0, %v183_v4 }
 0x158   :  { %v188_v8 = vsel %vm187_vm6, %v263_v0, %v184_v6 }
 0x159   :  { %v193_v9 = vsel %vm190_vm7, %v192_v7, %v188_v8 }
 0x15a   :  { %195 = vst [vmem:[#allocation8 + $0x8] sm:$0xff] %v193_v9 }
 0x15b   :  { %208 = dma.vmem_to_hbm [thread:$0]  %s201_s4, 256, %s203_s13, [#allocation4], %s367_s26, %s367_s26, %s368_s27  }
 0x15c   :  { %364 = dma.done.wait [#allocation4], 256  }
 0x15d   :  { %365 = vsyncadd [#allocation4], 4294967040 }
 0x15e   :  { %213 = vsyncpa [#allocation3], 1 }
 0x15f   :  { %214 = vsyncpa [#allocation6], 1 }
 0x160   :  { %215 = vsyncpa [#allocation4], 1 }

</bundles_post_ra>
